<compile_context>
chip_gen: v5e
topology: v5e:2x2
jax: 0.10.0
libtpu: 0.0.40
codegen_flags: <defaults>
</compile_context>

<pallas_src>
import jax
import jax.numpy as jnp
from jax.experimental import pallas as pl
from jax.experimental.pallas import tpu as pltpu

EPS = 1e-5
CLASSES = 10           # nn.Linear(32, classes); small for the demo
HIDDEN = 32
FEAT = 512
FEAT3 = 3 * FEAT       # 1536: concatenated pooled features of the 3 heads
HPAD = 128             # 3*32 hidden units padded to a full lane register
CPAD = 128             # classes padded to a full lane register (lane-dense vst)


# ---------------------------------------------------------------------------
# Kernel: fused 3-head classifier = two MXU matmuls + ReLU + bias adds.
# BN folding and the final /3 are pre-applied to the weights on the host.
# ---------------------------------------------------------------------------
def fused_head_kernel(x_ref, w1_ref, b1_ref, w2_ref, b2_ref, out_ref):
    h = jnp.dot(x_ref[...], w1_ref[...],
                preferred_element_type=jnp.float32) + b1_ref[...]
    h = jnp.maximum(h, 0.0)
    out_ref[...] = jnp.dot(h, w2_ref[...],
                           preferred_element_type=jnp.float32) + b2_ref[...]


# ---------------------------------------------------------------------------
# Host-side glue: pooling (layout plumbing) and weight folding/fusion.
# ---------------------------------------------------------------------------
def adaptive_avg_pool_flat(x, oh, ow):
    """(B, C, H, W) NCHW -> (B, C*oh*ow), matching torch's
    AdaptiveAvgPool2d((oh, ow)) + .view(B, -1) ordering (index c*oh*ow+i*ow+j).
    Requires H % oh == 0 and W % ow == 0."""
    B, C, H, W = x.shape
    hi, wi = H // oh, W // ow
    g = x.reshape(B, C, oh, hi, ow, wi)
    p = g.mean(axis=(3, 5))                      # (B, C, oh, ow)
    return p.reshape(B, C * oh * ow)             # (B, 512)


def init_classifier(key, in_f=FEAT, hid=HIDDEN, classes=CLASSES):
    """classifier = BN1d(512) -> Linear(512,32) -> BN1d(32) -> ReLU -> Linear(32,classes)."""
    k1, k2, k3, k4 = jax.random.split(key, 4)
    bnd1 = 1.0 / (in_f ** 0.5)
    w1 = jax.random.uniform(k1, (in_f, hid), jnp.float32, -bnd1, bnd1)
    b1 = jax.random.uniform(k2, (1, hid), jnp.float32, -bnd1, bnd1)
    bnd2 = 1.0 / (hid ** 0.5)
    w2 = jax.random.uniform(k3, (hid, classes), jnp.float32, -bnd2, bnd2)
    b2 = jax.random.uniform(k4, (1, classes), jnp.float32, -bnd2, bnd2)
    # BN params at PyTorch init: gamma=1, beta=0, running_mean=0, running_var=1
    bn1 = jnp.stack([jnp.ones(in_f), jnp.zeros(in_f),
                     jnp.zeros(in_f), jnp.ones(in_f)]).astype(jnp.float32)
    bn2 = jnp.stack([jnp.ones(hid), jnp.zeros(hid),
                     jnp.zeros(hid), jnp.ones(hid)]).astype(jnp.float32)
    return [bn1, w1, b1, bn2, w2, b2]


def _fold_head(params):
    """Fold eval-mode BN1d(512) and BN1d(32) into the Linear(512,32)."""
    bn1, w1, b1, bn2, w2, b2 = params
    g1, be1, m1, v1 = bn1[0], bn1[1], bn1[2], bn1[3]
    g2, be2, m2, v2 = bn2[0], bn2[1], bn2[2], bn2[3]
    s1 = g1 / jnp.sqrt(v1 + EPS)
    sh1 = be1 - m1 * s1
    w1f = w1 * s1[:, None]                       # BN1 scale into rows of w1
    b1f = sh1 @ w1 + b1[0]                       # BN1 shift into bias
    s2 = g2 / jnp.sqrt(v2 + EPS)
    sh2 = be2 - m2 * s2
    w1ff = w1f * s2[None, :]                     # BN2 scale into cols of w1
    b1ff = b1f * s2 + sh2                        # BN2 into bias
    return w1ff, b1ff, w2, b2[0]


def fuse_heads(p1, p2, p3, classes=CLASSES):
    """Build the fused block-diagonal / stacked weights (with /3 folded in)."""
    w1a, b1a, w2a, b2a = _fold_head(p1)
    w1b, b1b, w2b, b2b = _fold_head(p2)
    w1c, b1c, w2c, b2c = _fold_head(p3)
    hid = w1a.shape[1]

    W1 = jnp.zeros((FEAT3, HPAD), jnp.float32)
    W1 = W1.at[0:FEAT, 0:hid].set(w1a)
    W1 = W1.at[FEAT:2 * FEAT, hid:2 * hid].set(w1b)
    W1 = W1.at[2 * FEAT:3 * FEAT, 2 * hid:3 * hid].set(w1c)
    B1 = jnp.zeros((1, HPAD), jnp.float32)
    B1 = B1.at[0, :3 * hid].set(jnp.concatenate([b1a, b1b, b1c]))

    W2 = jnp.zeros((HPAD, CPAD), jnp.float32)
    W2 = W2.at[0:hid, :classes].set(w2a / 3.0)
    W2 = W2.at[hid:2 * hid, :classes].set(w2b / 3.0)
    W2 = W2.at[2 * hid:3 * hid, :classes].set(w2c / 3.0)
    B2 = jnp.zeros((1, CPAD), jnp.float32)
    B2 = B2.at[0, :classes].set((b2a + b2b + b2c) / 3.0)
    return W1, B1, W2, B2


def network_forward(x3, x4, x5, params1, params2, params3, classes=CLASSES):
    B = x3.shape[0]
    # adaptive pooling in the wrapper -> kernel only sees (B, 1536)
    pooled = jnp.concatenate([adaptive_avg_pool_flat(x3, 2, 2),
                              adaptive_avg_pool_flat(x4, 1, 2),
                              adaptive_avg_pool_flat(x5, 1, 1)], axis=1)
    W1, B1, W2, B2 = fuse_heads(params1, params2, params3, classes)

    # batch grid: large tiles (per-step overhead ~0.35us), parallel for megacore
    B_TILE = B if B <= 512 else 512
    Bp = pl.cdiv(B, B_TILE) * B_TILE
    if Bp != B:
        pooled = jnp.pad(pooled, ((0, Bp - B), (0, 0)))

    out = pl.pallas_call(
        fused_head_kernel,
        out_shape=jax.ShapeDtypeStruct((Bp, CPAD), jnp.float32),
        grid=(Bp // B_TILE,),
        in_specs=[
            pl.BlockSpec((B_TILE, FEAT3), lambda i: (i, 0)),   # activations
            pl.BlockSpec((FEAT3, HPAD), lambda i: (0, 0)),     # fused W1
            pl.BlockSpec((1, HPAD), lambda i: (0, 0)),         # fused b1
            pl.BlockSpec((HPAD, CPAD), lambda i: (0, 0)),      # fused W2 (/3)
            pl.BlockSpec((1, CPAD), lambda i: (0, 0)),         # fused b2 (/3)
        ],
        out_specs=pl.BlockSpec((B_TILE, CPAD), lambda i: (i, 0)),
        compiler_params=pltpu.CompilerParams(
            dimension_semantics=("parallel",),
            vmem_limit_bytes=64 * 1024 * 1024),
    )(pooled, W1, B1, W2, B2)
    return out[:B, :classes]


# pure-JAX reference (unfolded BN, per-head) for correctness check
def _reference(x3, x4, x5, p1, p2, p3):
    def head(xl, p):
        bn1, w1, b1, bn2, w2, b2 = p
        h = (xl - bn1[2]) / jnp.sqrt(bn1[3] + EPS) * bn1[0] + bn1[1]
        h = h @ w1 + b1
        h = (h - bn2[2]) / jnp.sqrt(bn2[3] + EPS) * bn2[0] + bn2[1]
        h = jnp.maximum(h, 0.0)
        return h @ w2 + b2
    xl1 = adaptive_avg_pool_flat(x3, 2, 2)
    xl2 = adaptive_avg_pool_flat(x4, 1, 2)
    xl3 = adaptive_avg_pool_flat(x5, 1, 1)
    return (head(xl1, p1) + head(xl2, p2) + head(xl3, p3)) / 3.0


if __name__ == "__main__":
    key = jax.random.PRNGKey(0)
    kx3, kx4, kx5, kp1, kp2, kp3 = jax.random.split(key, 6)

    B = 2
    # backbone feature maps (resnet18 layer2 / layer3 / layer4 channel counts)
    x3 = jax.random.normal(kx3, (B, 128, 8, 8), jnp.float32)
    x4 = jax.random.normal(kx4, (B, 256, 4, 4), jnp.float32)
    x5 = jax.random.normal(kx5, (B, 512, 4, 4), jnp.float32)

    params1 = init_classifier(kp1)
    params2 = init_classifier(kp2)
    params3 = init_classifier(kp3)

    out = network_forward(x3, x4, x5, params1, params2, params3)
    out = jax.block_until_ready(out)

    ref = _reference(x3, x4, x5, params1, params2, params3)
    assert out.shape == (B, CLASSES)
    assert jnp.allclose(out, ref, rtol=1e-4, atol=1e-4), (out, ref)
    print("KERNEL_OK")
</pallas_src>

<mosaic_0001>
module attributes {stable_mosaic.version = 11 : i64} {
  func.func @fused_head_kernel(%arg0: i32, %arg1: memref<2x1536xf32, #tpu.memory_space<vmem>>, %arg2: memref<1536x128xf32, #tpu.memory_space<vmem>>, %arg3: memref<1x128xf32, #tpu.memory_space<vmem>>, %arg4: memref<128x128xf32, #tpu.memory_space<vmem>>, %arg5: memref<1x128xf32, #tpu.memory_space<vmem>>, %arg6: memref<2x128xf32, #tpu.memory_space<vmem>>) attributes {dimension_semantics = [#tpu.dimension_semantics<parallel>], iteration_bounds = array<i64: 1>, scalar_prefetch = 0 : i64, scratch_operands = 0 : i64, tpu.core_type = #tpu.core_type<tc>, window_params = [{transform_indices = @transform_0, window_bounds = array<i64: 2, 1536>}, {pipeline_mode = #tpu.pipeline_mode<synchronous>, transform_indices = @transform_1, window_bounds = array<i64: 1536, 128>}, {pipeline_mode = #tpu.pipeline_mode<synchronous>, transform_indices = @transform_2, window_bounds = array<i64: 1, 128>}, {pipeline_mode = #tpu.pipeline_mode<synchronous>, transform_indices = @transform_3, window_bounds = array<i64: 128, 128>}, {pipeline_mode = #tpu.pipeline_mode<synchronous>, transform_indices = @transform_4, window_bounds = array<i64: 1, 128>}, {transform_indices = @transform_5, window_bounds = array<i64: 2, 128>}]} {
    %c0 = arith.constant 0 : index
    %c0_0 = arith.constant 0 : index
    %0 = vector.load %arg1[%c0, %c0_0] : memref<2x1536xf32, #tpu.memory_space<vmem>>, vector<2x1536xf32>
    %c0_1 = arith.constant 0 : index
    %c0_2 = arith.constant 0 : index
    %1 = vector.load %arg2[%c0_1, %c0_2] : memref<1536x128xf32, #tpu.memory_space<vmem>>, vector<1536x128xf32>
    %cst = arith.constant dense<0.000000e+00> : vector<2x128xf32>
    %2 = tpu.matmul %0, %1, %cst {dimension_numbers = #tpu.dot_dimension_numbers<[1], [0], [0], [1], [0, 0, 1, 1], [], []>} : vector<2x1536xf32>, vector<1536x128xf32>, vector<2x128xf32> -> vector<2x128xf32>
    %c0_3 = arith.constant 0 : index
    %c0_4 = arith.constant 0 : index
    %3 = vector.load %arg3[%c0_3, %c0_4] : memref<1x128xf32, #tpu.memory_space<vmem>>, vector<1x128xf32>
    %4 = vector.broadcast %3 : vector<1x128xf32> to vector<2x128xf32>
    %5 = arith.addf %2, %4 : vector<2x128xf32>
    %cst_5 = arith.constant 0.000000e+00 : f32
    %6 = vector.broadcast %cst_5 : f32 to vector<2x128xf32>
    %7 = arith.maximumf %5, %6 : vector<2x128xf32>
    %c0_6 = arith.constant 0 : index
    %c0_7 = arith.constant 0 : index
    %8 = vector.load %arg4[%c0_6, %c0_7] : memref<128x128xf32, #tpu.memory_space<vmem>>, vector<128x128xf32>
    %cst_8 = arith.constant dense<0.000000e+00> : vector<2x128xf32>
    %9 = tpu.matmul %7, %8, %cst_8 {dimension_numbers = #tpu.dot_dimension_numbers<[1], [0], [0], [1], [0, 0, 1, 1], [], []>} : vector<2x128xf32>, vector<128x128xf32>, vector<2x128xf32> -> vector<2x128xf32>
    %c0_9 = arith.constant 0 : index
    %c0_10 = arith.constant 0 : index
    %10 = vector.load %arg5[%c0_9, %c0_10] : memref<1x128xf32, #tpu.memory_space<vmem>>, vector<1x128xf32>
    %11 = vector.broadcast %10 : vector<1x128xf32> to vector<2x128xf32>
    %12 = arith.addf %9, %11 : vector<2x128xf32>
    %c0_11 = arith.constant 0 : index
    %c0_12 = arith.constant 0 : index
    %13 = vector.load %arg6[%c0_11, %c0_12] : memref<2x128xf32, #tpu.memory_space<vmem>>, vector<2x128xf32>
    tpu.vector_store %arg6[%c0_11, %c0_12], %12 {strides = array<i32>} : memref<2x128xf32, #tpu.memory_space<vmem>>, vector<2x128xf32>,
    return
  }
  func.func @transform_0(%arg0: i32) -> (i32, i32) {
    %c0_i32 = arith.constant 0 : i32
    %c0_i32_0 = arith.constant 0 : i32
    return %arg0, %c0_i32 : i32, i32
  }
  func.func @transform_1(%arg0: i32) -> (i32, i32) {
    %c0_i32 = arith.constant 0 : i32
    %c0_i32_0 = arith.constant 0 : i32
    %c0_i32_1 = arith.constant 0 : i32
    return %c0_i32, %c0_i32_0 : i32, i32
  }
  func.func @transform_2(%arg0: i32) -> (i32, i32) {
    %c0_i32 = arith.constant 0 : i32
    %c0_i32_0 = arith.constant 0 : i32
    %c0_i32_1 = arith.constant 0 : i32
    return %c0_i32, %c0_i32_0 : i32, i32
  }
  func.func @transform_3(%arg0: i32) -> (i32, i32) {
    %c0_i32 = arith.constant 0 : i32
    %c0_i32_0 = arith.constant 0 : i32
    %c0_i32_1 = arith.constant 0 : i32
    return %c0_i32, %c0_i32_0 : i32, i32
  }
  func.func @transform_4(%arg0: i32) -> (i32, i32) {
    %c0_i32 = arith.constant 0 : i32
    %c0_i32_0 = arith.constant 0 : i32
    %c0_i32_1 = arith.constant 0 : i32
    return %c0_i32, %c0_i32_0 : i32, i32
  }
  func.func @transform_5(%arg0: i32) -> (i32, i32) {
    %c0_i32 = arith.constant 0 : i32
    %c0_i32_0 = arith.constant 0 : i32
    return %arg0, %c0_i32 : i32, i32
  }
}

</mosaic_0001>

<bundles_post_ra>
// kernel: tpu_custom_call.1
= control target key start
LH: loop header
LB: loop body
LE: loop exit
PB: predicated region body
PF: predicated region fallthrough
CT: control target
= control target key end

     0   :  { %10 = vsyncpa [#allocation3], 0  ;;  %s760_s0 = inlined_call_operand.hbm [shape: f32[2,1536], index: 0, kind: input, shape index: {}]   ;;  %s761_s1 = inlined_call_operand.hbm [shape: f32[1536,128], index: 1, kind: input, shape index: {}]   ;;  %s762_s2 = inlined_call_operand.vmem [shape: f32[1,128], index: 2, kind: input, shape index: {}]   ;;  %s763_s3 = inlined_call_operand.hbm [shape: f32[128,128], index: 3, kind: input, shape index: {}]   ;;  %s764_s4 = inlined_call_operand.vmem [shape: f32[1,128], index: 4, kind: input, shape index: {}]   ;;  %s765_s5 = inlined_call_operand.hbm [shape: f32[2,128], index: 5, kind: output, shape index: {}]  }
   0x1   :  { %11 = vsyncpa [#allocation6], 0  ;;  %s28_s20 = sshll.u32 %s761_s1, 4  ;;  %s29_s20 = int_to_ptr.hbm [resolvable:$true] %s28_s20 }
   0x2   :  { %12 = vsyncpa [#allocation4], 0  ;;  %s706_s21 = smov [#allocation5]   ;;  %s18_s25 = sshll.u32 %s760_s0, 4  ;;  %s19_s25 = int_to_ptr.hbm [resolvable:$true] %s18_s25 }
   0x3   :  { %s30_s22 = sshll.u32 %s706_s21, 4  ;;  %s707_s26 = smov 128   ;;  %s31_s22 = int_to_ptr.vmem [resolvable:$true] %s30_s22 }
   0x4   :  { %s708_s27 = smov 8   ;;  %s709_s28 = smov [#allocation2]  }
   0x5   :  { %36 = dma.hbm_to_vmem [thread:$0]  %s29_s20, 24576, %s31_s22, [#allocation6], %s707_s26, %s707_s26, %s708_s27  }
   0x6   :  { %s20_s29 = sshll.u32 %s709_s28, 4  ;;  %s43_s7 = sshll.u32 %s763_s3, 4  ;;  %s21_s29 = int_to_ptr.vmem [resolvable:$true] %s20_s29  ;;  %s44_s7 = int_to_ptr.hbm [resolvable:$true] %s43_s7 }
   0x7   :  { %23 = dma.hbm_to_vmem [thread:$0]  %s19_s25, 384, %s21_s29, [#allocation3]  }
   0x8   :  { %s710_s1 = smov [#allocation7]  }
   0x9   :  { %s45_s8 = sshll.u32 %s710_s1, 4  ;;  %s46_s8 = int_to_ptr.vmem [resolvable:$true] %s45_s8 }
   0xa   :  { %51 = dma.hbm_to_vmem [thread:$0]  %s44_s7, 2048, %s46_s8, [#allocation6], %s707_s26, %s707_s26, %s708_s27  }
   0xb   :  { %700 = dma.done.wait [#allocation3], 384  }
   0xc   :  { %701 = vsyncadd [#allocation3], 4294966912 }
   0xd   :  { %702 = dma.done.wait [#allocation6], 26624  }
   0xe   :  { %703 = vsyncadd [#allocation6], 4294940672  ;;  %v84_v0 = vld [vmem:[#allocation5 + $0x78] sm:$0xff]  ;;  %v83_v2 = vld [vmem:[#allocation5 + $0x70] sm:$0xff]  ;;  %s711_s10 = smov [#allocation8]   ;;  %s585_s14 = sshll.u32 %s765_s5, 4  ;;  %s586_s14 = int_to_ptr.hbm [resolvable:$true] %s585_s14 }
   0xf   :  { %v116_v1 = vld [vmem:[#allocation5 + $0x178] sm:$0xff]  ;;  %296 = vmatpush.msra.mxu0 %v84_v0  ;;  %v115_v4 = vld [vmem:[#allocation5 + $0x170] sm:$0xff]  ;;  %v82_v6 = vld [vmem:[#allocation5 + $0x68] sm:$0xff]  ;;  %s583_s11 = sshll.u32 %s711_s10, 4  ;;  %s584_s11 = int_to_ptr.vmem [resolvable:$true] %s583_s11 }
  0x10   :  { %336 = vmatpush.msra.mxu2 %v116_v1  ;;  %v100_v3 = vld [vmem:[#allocation5 + $0xf8] sm:$0xff]  ;;  %v99_v7 = vld [vmem:[#allocation5 + $0xf0] sm:$0xff]  ;;  %v114_v8 = vld [vmem:[#allocation5 + $0x168] sm:$0xff] }
  0x11   :  { %v132_v5 = vld [vmem:[#allocation5 + $0x1f8] sm:$0xff]  ;;  %316 = vmatpush.msra.mxu1 %v100_v3  ;;  %297 = vmatpush.msra.mxu0 %v83_v2  ;;  %v131_v9 = vld [vmem:[#allocation5 + $0x1f0] sm:$0xff]  ;;  %v98_v10 = vld [vmem:[#allocation5 + $0xe8] sm:$0xff] }
  0x12   :  { %356 = vmatpush.msra.mxu3 %v132_v5  ;;  %337 = vmatpush.msra.mxu2 %v115_v4  ;;  %v81_v11 = vld [vmem:[#allocation5 + $0x60] sm:$0xff]  ;;  %v130_v13 = vld [vmem:[#allocation5 + $0x1e8] sm:$0xff]  ;;  %v80_v16 = vld [vmem:[#allocation5 + $0x58] sm:$0xff] }
  0x13   :  { %317 = vmatpush.msra.mxu1 %v99_v7  ;;  %v113_v12 = vld [vmem:[#allocation5 + $0x160] sm:$0xff]  ;;  %298 = vmatpush.msra.mxu0 %v82_v6  ;;  %v112_v17 = vld [vmem:[#allocation5 + $0x158] sm:$0xff]  ;;  %v79_v20 = vld [vmem:[#allocation5 + $0x50] sm:$0xff] }
  0x14   :  { %357 = vmatpush.msra.mxu3 %v131_v9  ;;  %338 = vmatpush.msra.mxu2 %v114_v8  ;;  %v97_v14 = vld [vmem:[#allocation5 + $0xe0] sm:$0xff]  ;;  %v96_v18 = vld [vmem:[#allocation5 + $0xd8] sm:$0xff]  ;;  %v111_v21 = vld [vmem:[#allocation5 + $0x150] sm:$0xff] }
  0x15   :  { %v129_v15 = vld [vmem:[#allocation5 + $0x1e0] sm:$0xff]  ;;  %318 = vmatpush.msra.mxu1 %v98_v10  ;;  %299 = vmatpush.msra.mxu0 %v81_v11  ;;  %v128_v19 = vld [vmem:[#allocation5 + $0x1d8] sm:$0xff]  ;;  %v95_v22 = vld [vmem:[#allocation5 + $0xd0] sm:$0xff] }
  0x16   :  { %358 = vmatpush.msra.mxu3 %v130_v13  ;;  %339 = vmatpush.msra.mxu2 %v113_v12  ;;  %v127_v23 = vld [vmem:[#allocation5 + $0x1d0] sm:$0xff]  ;;  %v78_v24 = vld [vmem:[#allocation5 + $0x48] sm:$0xff]  ;;  %v77_v28 = vld [vmem:[#allocation5 + $0x40] sm:$0xff] }
  0x17   :  { %319 = vmatpush.msra.mxu1 %v97_v14  ;;  %300 = vmatpush.msra.mxu0 %v80_v16  ;;  %v110_v25 = vld [vmem:[#allocation5 + $0x148] sm:$0xff]  ;;  %v109_v29 = vld [vmem:[#allocation5 + $0x140] sm:$0xff]  ;;  %v76_v32 = vld [vmem:[#allocation5 + $0x38] sm:$0xff] }
  0x18   :  { %359 = vmatpush.msra.mxu3 %v129_v15  ;;  %340 = vmatpush.msra.mxu2 %v112_v17  ;;  %v94_v26 = vld [vmem:[#allocation5 + $0xc8] sm:$0xff]  ;;  %v93_v30 = vld [vmem:[#allocation5 + $0xc0] sm:$0xff]  ;;  %v108_v33 = vld [vmem:[#allocation5 + $0x138] sm:$0xff] }
  0x19   :  { %320 = vmatpush.msra.mxu1 %v96_v18  ;;  %301 = vmatpush.msra.mxu0 %v79_v20  ;;  %v126_v27 = vld [vmem:[#allocation5 + $0x1c8] sm:$0xff]  ;;  %v125_v31 = vld [vmem:[#allocation5 + $0x1c0] sm:$0xff]  ;;  %v92_v34 = vld [vmem:[#allocation5 + $0xb8] sm:$0xff] }
  0x1a   :  { %360 = vmatpush.msra.mxu3 %v128_v19  ;;  %341 = vmatpush.msra.mxu2 %v111_v21  ;;  %v124_v35 = vld [vmem:[#allocation5 + $0x1b8] sm:$0xff]  ;;  %v75_v36 = vld [vmem:[#allocation5 + $0x30] sm:$0xff]  ;;  %v74_v40 = vld [vmem:[#allocation5 + $0x28] sm:$0xff] }
  0x1b   :  { %321 = vmatpush.msra.mxu1 %v95_v22  ;;  %302 = vmatpush.msra.mxu0 %v78_v24  ;;  %v107_v37 = vld [vmem:[#allocation5 + $0x130] sm:$0xff]  ;;  %v106_v41 = vld [vmem:[#allocation5 + $0x128] sm:$0xff]  ;;  %v73_v44 = vld [vmem:[#allocation5 + $0x20] sm:$0xff] }
  0x1c   :  { %361 = vmatpush.msra.mxu3 %v127_v23  ;;  %342 = vmatpush.msra.mxu2 %v110_v25  ;;  %v91_v38 = vld [vmem:[#allocation5 + $0xb0] sm:$0xff]  ;;  %v90_v42 = vld [vmem:[#allocation5 + $0xa8] sm:$0xff]  ;;  %v105_v45 = vld [vmem:[#allocation5 + $0x120] sm:$0xff] }
  0x1d   :  { %322 = vmatpush.msra.mxu1 %v94_v26  ;;  %303 = vmatpush.msra.mxu0 %v77_v28  ;;  %v123_v39 = vld [vmem:[#allocation5 + $0x1b0] sm:$0xff]  ;;  %v122_v43 = vld [vmem:[#allocation5 + $0x1a8] sm:$0xff]  ;;  %v89_v46 = vld [vmem:[#allocation5 + $0xa0] sm:$0xff] }
  0x1e   :  { %362 = vmatpush.msra.mxu3 %v126_v27  ;;  %343 = vmatpush.msra.mxu2 %v109_v29  ;;  %v121_v47 = vld [vmem:[#allocation5 + $0x1a0] sm:$0xff]  ;;  %v72_v48 = vld [vmem:[#allocation5 + $0x18] sm:$0xff]  ;;  %v71_v52 = vld [vmem:[#allocation5 + $0x10] sm:$0xff] }
  0x1f   :  { %323 = vmatpush.msra.mxu1 %v93_v30  ;;  %304 = vmatpush.msra.mxu0 %v76_v32  ;;  %v104_v49 = vld [vmem:[#allocation5 + $0x118] sm:$0xff]  ;;  %v103_v53 = vld [vmem:[#allocation5 + $0x110] sm:$0xff]  ;;  %v70_v56 = vld [vmem:[#allocation5 + $0x8] sm:$0xff] }
  0x20   :  { %363 = vmatpush.msra.mxu3 %v125_v31  ;;  %344 = vmatpush.msra.mxu2 %v108_v33  ;;  %v88_v50 = vld [vmem:[#allocation5 + $0x98] sm:$0xff]  ;;  %v87_v54 = vld [vmem:[#allocation5 + $0x90] sm:$0xff]  ;;  %v102_v57 = vld [vmem:[#allocation5 + $0x108] sm:$0xff] }
  0x21   :  { %324 = vmatpush.msra.mxu1 %v92_v34  ;;  %305 = vmatpush.msra.mxu0 %v75_v36  ;;  %v120_v51 = vld [vmem:[#allocation5 + $0x198] sm:$0xff]  ;;  %v119_v55 = vld [vmem:[#allocation5 + $0x190] sm:$0xff]  ;;  %v86_v58 = vld [vmem:[#allocation5 + $0x88] sm:$0xff] }
  0x22   :  { %364 = vmatpush.msra.mxu3 %v124_v35  ;;  %345 = vmatpush.msra.mxu2 %v107_v37  ;;  %v118_v59 = vld [vmem:[#allocation5 + $0x188] sm:$0xff]  ;;  %v69_v60 = vld [vmem:[#allocation5] sm:$0xff]  ;;  %v148_v62 = vld [vmem:[#allocation5 + $0x278] sm:$0xff] }
  0x23   :  { %325 = vmatpush.msra.mxu1 %v91_v38  ;;  %306 = vmatpush.msra.mxu0 %v74_v40  ;;  %v101_v61 = vld [vmem:[#allocation5 + $0x100] sm:$0xff]  ;;  %v180_v63 = vld [vmem:[#allocation5 + $0x378] sm:$0xff]  ;;  %v147_v2 = vld [vmem:[#allocation5 + $0x270] sm:$0xff] }
  0x24   :  { %365 = vmatpush.msra.mxu3 %v123_v39  ;;  %346 = vmatpush.msra.mxu2 %v106_v41  ;;  %v85_v0 = vld [vmem:[#allocation5 + $0x80] sm:$0xff]  ;;  %v164_v3 = vld [vmem:[#allocation5 + $0x2f8] sm:$0xff]  ;;  %v179_v4 = vld [vmem:[#allocation5 + $0x370] sm:$0xff] }
  0x25   :  { %326 = vmatpush.msra.mxu1 %v90_v42  ;;  %307 = vmatpush.msra.mxu0 %v73_v44  ;;  %v117_v1 = vld [vmem:[#allocation5 + $0x180] sm:$0xff]  ;;  %v196_v5 = vld [vmem:[#allocation5 + $0x3f8] sm:$0xff]  ;;  %v146_v6 = vld [vmem:[#allocation5 + $0x268] sm:$0xff] }
  0x26   :  { %366 = vmatpush.msra.mxu3 %v122_v43  ;;  %347 = vmatpush.msra.mxu2 %v105_v45  ;;  %v163_v7 = vld [vmem:[#allocation5 + $0x2f0] sm:$0xff]  ;;  %v178_v8 = vld [vmem:[#allocation5 + $0x368] sm:$0xff]  ;;  %v145_v10 = vld [vmem:[#allocation5 + $0x260] sm:$0xff] }
  0x27   :  { %327 = vmatpush.msra.mxu1 %v89_v46  ;;  %308 = vmatpush.msra.mxu0 %v72_v48  ;;  %v195_v9 = vld [vmem:[#allocation5 + $0x3f0] sm:$0xff]  ;;  %v162_v11 = vld [vmem:[#allocation5 + $0x2e8] sm:$0xff]  ;;  %v177_v12 = vld [vmem:[#allocation5 + $0x360] sm:$0xff] }
  0x28   :  { %367 = vmatpush.msra.mxu3 %v121_v47  ;;  %348 = vmatpush.msra.mxu2 %v104_v49  ;;  %v194_v13 = vld [vmem:[#allocation5 + $0x3e8] sm:$0xff]  ;;  %v144_v14 = vld [vmem:[#allocation5 + $0x258] sm:$0xff]  ;;  %v161_v15 = vld [vmem:[#allocation5 + $0x2e0] sm:$0xff] }
  0x29   :  { %328 = vmatpush.msra.mxu1 %v88_v50  ;;  %309 = vmatpush.msra.mxu0 %v71_v52  ;;  %v176_v16 = vld [vmem:[#allocation5 + $0x358] sm:$0xff]  ;;  %v193_v17 = vld [vmem:[#allocation5 + $0x3e0] sm:$0xff]  ;;  %v143_v18 = vld [vmem:[#allocation5 + $0x250] sm:$0xff] }
  0x2a   :  { %368 = vmatpush.msra.mxu3 %v120_v51  ;;  %349 = vmatpush.msra.mxu2 %v103_v53  ;;  %v160_v19 = vld [vmem:[#allocation5 + $0x2d8] sm:$0xff]  ;;  %v175_v20 = vld [vmem:[#allocation5 + $0x350] sm:$0xff]  ;;  %v142_v22 = vld [vmem:[#allocation5 + $0x248] sm:$0xff] }
  0x2b   :  { %329 = vmatpush.msra.mxu1 %v87_v54  ;;  %310 = vmatpush.msra.mxu0 %v70_v56  ;;  %v192_v21 = vld [vmem:[#allocation5 + $0x3d8] sm:$0xff]  ;;  %v159_v23 = vld [vmem:[#allocation5 + $0x2d0] sm:$0xff]  ;;  %v174_v24 = vld [vmem:[#allocation5 + $0x348] sm:$0xff] }
  0x2c   :  { %369 = vmatpush.msra.mxu3 %v119_v55  ;;  %350 = vmatpush.msra.mxu2 %v102_v57  ;;  %v191_v25 = vld [vmem:[#allocation5 + $0x3d0] sm:$0xff]  ;;  %v66_v26 = vld [vmem:[#allocation2] sm:$0xff]  ;;  %v141_v27 = vld [vmem:[#allocation5 + $0x240] sm:$0xff] }
  0x2d   :  { %330 = vmatpush.msra.mxu1 %v86_v58  ;;  %311 = vmatpush.msra.mxu0 %v69_v60  ;;  %v158_v28 = vld [vmem:[#allocation5 + $0x2c8] sm:$0xff]  ;;  %268 = vst [vmem:[#allocation1] ss:$4 sm:$0xff] %v66_v26  ;;  %v173_v29 = vld [vmem:[#allocation5 + $0x340] sm:$0xff]  ;;  %v140_v31 = vld [vmem:[#allocation5 + $0x238] sm:$0xff] }
  0x2e   :  { %370 = vmatpush.msra.mxu3 %v118_v59  ;;  %351 = vmatpush.msra.mxu2 %v101_v61  ;;  %v190_v30 = vld [vmem:[#allocation5 + $0x3c8] sm:$0xff]  ;;  %v157_v32 = vld [vmem:[#allocation5 + $0x2c0] sm:$0xff]  ;;  %v172_v33 = vld [vmem:[#allocation5 + $0x338] sm:$0xff] }
  0x2f   :  { %376 = vmatpush.msrb.mxu0 %v148_v62  ;;  %331 = vmatpush.msra.mxu1 %v85_v0  ;;  %v189_v34 = vld [vmem:[#allocation5 + $0x3c0] sm:$0xff]  ;;  %v139_v35 = vld [vmem:[#allocation5 + $0x230] sm:$0xff]  ;;  %v156_v36 = vld [vmem:[#allocation5 + $0x2b8] sm:$0xff] }
  0x30   :  { %416 = vmatpush.msrb.mxu2 %v180_v63  ;;  %371 = vmatpush.msra.mxu3 %v117_v1  ;;  %v171_v37 = vld [vmem:[#allocation5 + $0x330] sm:$0xff]  ;;  %v188_v38 = vld [vmem:[#allocation5 + $0x3b8] sm:$0xff]  ;;  %v138_v39 = vld [vmem:[#allocation5 + $0x228] sm:$0xff] }
  0x31   :  { %377 = vmatpush.msrb.mxu0 %v147_v2  ;;  %396 = vmatpush.msrb.mxu1 %v164_v3  ;;  %v155_v40 = vld [vmem:[#allocation5 + $0x2b0] sm:$0xff]  ;;  %v170_v41 = vld [vmem:[#allocation5 + $0x328] sm:$0xff]  ;;  %v137_v44 = vld [vmem:[#allocation5 + $0x220] sm:$0xff] }
  0x32   :  { %417 = vmatpush.msrb.mxu2 %v179_v4  ;;  %436 = vmatpush.msrb.mxu3 %v196_v5  ;;  %v187_v42 = vld [vmem:[#allocation5 + $0x3b0] sm:$0xff]  ;;  %v154_v45 = vld [vmem:[#allocation5 + $0x2a8] sm:$0xff]  ;;  %v68_v46 = vld [vmem:[#allocation2 + $0x10] sm:$0xff] }
  0x33   :  { %378 = vmatpush.msrb.mxu0 %v146_v6  ;;  %397 = vmatpush.msrb.mxu1 %v163_v7  ;;  %v67_v43 = vld [vmem:[#allocation2 + $0x8] sm:$0xff]  ;;  %v169_v51 = vld [vmem:[#allocation5 + $0x320] sm:$0xff]  ;;  %v186_v52 = vld [vmem:[#allocation5 + $0x3a8] sm:$0xff] }
  0x34   :  { %418 = vmatpush.msrb.mxu2 %v178_v8  ;;  %437 = vmatpush.msrb.mxu3 %v195_v9  ;;  %270 = vst [vmem:[#allocation1 + $0x20] ss:$4 sm:$0xff] %v67_v43  ;;  %v271_v47 = vld.sshfl [vmem:[#allocation1] sm:$0xff pattern:$0x73625140]  ;;  %v136_v53 = vld [vmem:[#allocation5 + $0x218] sm:$0xff] }
  0x35   :  { %379 = vmatpush.msrb.mxu0 %v145_v10  ;;  %398 = vmatpush.msrb.mxu1 %v162_v11  ;;  %v273_v48 = vld.sshfl [vmem:[#allocation1 + $0x10] sm:$0xff pattern:$0x73625140]  ;;  %v272_v49 = vld.sshfl [vmem:[#allocation1 + $0x8] sm:$0xff pattern:$0x73625140] }
  0x36   :  { %419 = vmatpush.msrb.mxu2 %v177_v12  ;;  %438 = vmatpush.msrb.mxu3 %v194_v13  ;;  %v274_v50 = vld.sshfl [vmem:[#allocation1 + $0x18] sm:$0xff pattern:$0x73625140]  ;;  %v153_v54 = vld [vmem:[#allocation5 + $0x2a0] sm:$0xff]  ;;  %v135_v57 = vld [vmem:[#allocation5 + $0x210] sm:$0xff] }
  0x37   :  { %380 = vmatpush.msrb.mxu0 %v144_v14  ;;  %399 = vmatpush.msrb.mxu1 %v161_v15  ;;  %279 = vst [vmem:[#allocation1] ss:$4 sm:$0xff] %v68_v46  ;;  %v168_v55 = vld [vmem:[#allocation5 + $0x318] sm:$0xff]  ;;  %v185_v56 = vld [vmem:[#allocation5 + $0x3a0] sm:$0xff]  ;;  %v167_v59 = vld [vmem:[#allocation5 + $0x310] sm:$0xff] }
  0x38   :  { %420 = vmatpush.msrb.mxu2 %v176_v16  ;;  %439 = vmatpush.msrb.mxu3 %v193_v17  ;;  %v152_v58 = vld [vmem:[#allocation5 + $0x298] sm:$0xff]  ;;  %v134_v61 = vld [vmem:[#allocation5 + $0x208] sm:$0xff]  ;;  %v151_v62 = vld [vmem:[#allocation5 + $0x290] sm:$0xff] }
  0x39   :  { %381 = vmatpush.msrb.mxu0 %v143_v18  ;;  %400 = vmatpush.msrb.mxu1 %v160_v19  ;;  %v184_v60 = vld [vmem:[#allocation5 + $0x398] sm:$0xff]  ;;  %v166_v63 = vld [vmem:[#allocation5 + $0x308] sm:$0xff]  ;;  %v183_v0 = vld [vmem:[#allocation5 + $0x390] sm:$0xff] }
  0x3a   :  { %421 = vmatpush.msrb.mxu2 %v175_v20  ;;  %440 = vmatpush.msrb.mxu3 %v192_v21  ;;  %v133_v1 = vld [vmem:[#allocation5 + $0x200] sm:$0xff]  ;;  %v150_v2 = vld [vmem:[#allocation5 + $0x288] sm:$0xff]  ;;  %v212_v5 = vld [vmem:[#allocation5 + $0x478] sm:$0xff] }
  0x3b   :  { %382 = vmatpush.msrb.mxu0 %v142_v22  ;;  %401 = vmatpush.msrb.mxu1 %v159_v23  ;;  %v165_v3 = vld [vmem:[#allocation5 + $0x300] sm:$0xff]  ;;  %v182_v4 = vld [vmem:[#allocation5 + $0x388] sm:$0xff]  ;;  %v244_v6 = vld [vmem:[#allocation5 + $0x578] sm:$0xff] }
  0x3c   :  { %422 = vmatpush.msrb.mxu2 %v174_v24  ;;  %441 = vmatpush.msrb.mxu3 %v191_v25  ;;  %v149_v7 = vld [vmem:[#allocation5 + $0x280] sm:$0xff]  ;;  %v211_v9 = vld [vmem:[#allocation5 + $0x470] sm:$0xff]  ;;  %v228_v10 = vld [vmem:[#allocation5 + $0x4f8] sm:$0xff] }
  0x3d   :  { %383 = vmatpush.msrb.mxu0 %v141_v27  ;;  %402 = vmatpush.msrb.mxu1 %v158_v28  ;;  %v181_v8 = vld [vmem:[#allocation5 + $0x380] sm:$0xff]  ;;  %v243_v11 = vld [vmem:[#allocation5 + $0x570] sm:$0xff]  ;;  %v260_v12 = vld [vmem:[#allocation5 + $0x5f8] sm:$0xff] }
  0x3e   :  { %423 = vmatpush.msrb.mxu2 %v173_v29  ;;  %442 = vmatpush.msrb.mxu3 %v190_v30  ;;  %v210_v13 = vld [vmem:[#allocation5 + $0x468] sm:$0xff]  ;;  %v227_v14 = vld [vmem:[#allocation5 + $0x4f0] sm:$0xff]  ;;  %v209_v17 = vld [vmem:[#allocation5 + $0x460] sm:$0xff] }
  0x3f   :  { %384 = vmatpush.msrb.mxu0 %v140_v31  ;;  %403 = vmatpush.msrb.mxu1 %v157_v32  ;;  %v242_v15 = vld [vmem:[#allocation5 + $0x568] sm:$0xff]  ;;  %v259_v16 = vld [vmem:[#allocation5 + $0x5f0] sm:$0xff]  ;;  %v241_v19 = vld [vmem:[#allocation5 + $0x560] sm:$0xff] }
  0x40   :  { %424 = vmatpush.msrb.mxu2 %v172_v33  ;;  %443 = vmatpush.msrb.mxu3 %v189_v34  ;;  %v226_v18 = vld [vmem:[#allocation5 + $0x4e8] sm:$0xff]  ;;  %v277_v21 = vld.sshfl [vmem:[#allocation1 + $0x30] sm:$0xff pattern:$0x73625140]  ;;  %v208_v22 = vld [vmem:[#allocation5 + $0x458] sm:$0xff] }
  0x41   :  { %385 = vmatpush.msrb.mxu0 %v139_v35  ;;  %404 = vmatpush.msrb.mxu1 %v156_v36  ;;  %v258_v20 = vld [vmem:[#allocation5 + $0x5e8] sm:$0xff]  ;;  %v225_v23 = vld [vmem:[#allocation5 + $0x4e0] sm:$0xff]  ;;  %v240_v24 = vld [vmem:[#allocation5 + $0x558] sm:$0xff] }
  0x42   :  { %425 = vmatpush.msrb.mxu2 %v171_v37  ;;  %444 = vmatpush.msrb.mxu3 %v188_v38  ;;  %v257_v25 = vld [vmem:[#allocation5 + $0x5e0] sm:$0xff]  ;;  %v278_v27 = vld.sshfl [vmem:[#allocation1 + $0x38] sm:$0xff pattern:$0x73625140]  ;;  %v207_v28 = vld [vmem:[#allocation5 + $0x450] sm:$0xff] }
  0x43   :  { %386 = vmatpush.msrb.mxu0 %v138_v39  ;;  %405 = vmatpush.msrb.mxu1 %v155_v40  ;;  %v275_v26 = vld.sshfl [vmem:[#allocation1 + $0x20] sm:$0xff pattern:$0x73625140]  ;;  %v224_v29 = vld [vmem:[#allocation5 + $0x4d8] sm:$0xff]  ;;  %v239_v30 = vld [vmem:[#allocation5 + $0x550] sm:$0xff] }
  0x44   :  { %426 = vmatpush.msrb.mxu2 %v170_v41  ;;  %445 = vmatpush.msrb.mxu3 %v187_v42  ;;  %v256_v31 = vld [vmem:[#allocation5 + $0x5d8] sm:$0xff]  ;;  %v276_v32 = vld.sshfl [vmem:[#allocation1 + $0x28] sm:$0xff pattern:$0x73625140]  ;;  %v223_v34 = vld [vmem:[#allocation5 + $0x4d0] sm:$0xff] }
  0x45   :  { %387 = vmatpush.msrb.mxu0 %v137_v44  ;;  %406 = vmatpush.msrb.mxu1 %v154_v45  ;;  %v206_v33 = vld [vmem:[#allocation5 + $0x448] sm:$0xff]  ;;  %v255_v36 = vld [vmem:[#allocation5 + $0x5d0] sm:$0xff]  ;;  %v205_v37 = vld [vmem:[#allocation5 + $0x440] sm:$0xff] }
  0x46   :  { %427 = vmatpush.msrb.mxu2 %v169_v51  ;;  %446 = vmatpush.msrb.mxu3 %v186_v52  ;;  %v238_v35 = vld [vmem:[#allocation5 + $0x548] sm:$0xff]  ;;  %v237_v39 = vld [vmem:[#allocation5 + $0x540] sm:$0xff]  ;;  %v204_v41 = vld [vmem:[#allocation5 + $0x438] sm:$0xff] }
  0x47   :  { %388 = vmatpush.msrb.mxu0 %v136_v53  ;;  %407 = vmatpush.msrb.mxu1 %v153_v54  ;;  %v222_v38 = vld [vmem:[#allocation5 + $0x4c8] sm:$0xff]  ;;  %v221_v42 = vld [vmem:[#allocation5 + $0x4c0] sm:$0xff]  ;;  %v236_v43 = vld [vmem:[#allocation5 + $0x538] sm:$0xff] }
  0x48   :  { %428 = vmatpush.msrb.mxu2 %v168_v55  ;;  %447 = vmatpush.msrb.mxu3 %v185_v56  ;;  %v254_v40 = vld [vmem:[#allocation5 + $0x5c8] sm:$0xff]  ;;  %v253_v44 = vld [vmem:[#allocation5 + $0x5c0] sm:$0xff]  ;;  %v203_v45 = vld [vmem:[#allocation5 + $0x430] sm:$0xff] }
  0x49   :  { %389 = vmatpush.msrb.mxu0 %v135_v57  ;;  %408 = vmatpush.msrb.mxu1 %v152_v58  ;;  %v220_v46 = vld [vmem:[#allocation5 + $0x4b8] sm:$0xff]  ;;  %v234_v51 = vld [vmem:[#allocation5 + $0x528] sm:$0xff]  ;;  %v251_v52 = vld [vmem:[#allocation5 + $0x5b0] sm:$0xff] }
  0x4a   :  { %429 = vmatpush.msrb.mxu2 %v167_v59  ;;  %448 = vmatpush.msrb.mxu3 %v184_v60  ;;  %v201_v53 = vld [vmem:[#allocation5 + $0x420] sm:$0xff]  ;;  %v218_v54 = vld [vmem:[#allocation5 + $0x4a8] sm:$0xff]  ;;  %v200_v57 = vld [vmem:[#allocation5 + $0x418] sm:$0xff] }
  0x4b   :  { %390 = vmatpush.msrb.mxu0 %v134_v61  ;;  %409 = vmatpush.msrb.mxu1 %v151_v62  ;;  %v233_v55 = vld [vmem:[#allocation5 + $0x520] sm:$0xff]  ;;  %v250_v56 = vld [vmem:[#allocation5 + $0x5a8] sm:$0xff]  ;;  %v232_v59 = vld [vmem:[#allocation5 + $0x518] sm:$0xff] }
  0x4c   :  { %430 = vmatpush.msrb.mxu2 %v166_v63  ;;  %449 = vmatpush.msrb.mxu3 %v183_v0  ;;  %v217_v58 = vld [vmem:[#allocation5 + $0x4a0] sm:$0xff]  ;;  %v199_v61 = vld [vmem:[#allocation5 + $0x410] sm:$0xff]  ;;  %v216_v62 = vld [vmem:[#allocation5 + $0x498] sm:$0xff] }
  0x4d   :  { %391 = vmatpush.msrb.mxu0 %v133_v1  ;;  %410 = vmatpush.msrb.mxu1 %v150_v2  ;;  %v249_v60 = vld [vmem:[#allocation5 + $0x5a0] sm:$0xff]  ;;  %v231_v63 = vld [vmem:[#allocation5 + $0x510] sm:$0xff]  ;;  %v248_v0 = vld [vmem:[#allocation5 + $0x598] sm:$0xff] }
  0x4e   :  { %431 = vmatpush.msrb.mxu2 %v165_v3  ;;  %450 = vmatpush.msrb.mxu3 %v182_v4  ;;  %v198_v1 = vld [vmem:[#allocation5 + $0x408] sm:$0xff]  ;;  %v215_v2 = vld [vmem:[#allocation5 + $0x490] sm:$0xff] }
  0x4f   :  { %312 = vmatmul.f32.vlgmr.msra.gmra.mxu0 %v271_v47  ;;  %352 = vmatmul.f32.vlgmr.msra.gmra.mxu2 %v273_v48  ;;  %v235_v47 = vld [vmem:[#allocation5 + $0x530] sm:$0xff]  ;;  %v252_v48 = vld [vmem:[#allocation5 + $0x5b8] sm:$0xff]  ;;  %v230_v3 = vld [vmem:[#allocation5 + $0x508] sm:$0xff] }
  0x50   :  { %456 = vmatpush.msra.mxu0 %v212_v5  ;;  %496 = vmatpush.msra.mxu2 %v244_v6  ;;  %v247_v4 = vld [vmem:[#allocation5 + $0x590] sm:$0xff]  ;;  %v197_v5 = vld [vmem:[#allocation5 + $0x400] sm:$0xff]  ;;  %v214_v6 = vld [vmem:[#allocation5 + $0x488] sm:$0xff] }
  0x51   :  { %411 = vmatpush.msrb.mxu1 %v149_v7  ;;  %451 = vmatpush.msrb.mxu3 %v181_v8  ;;  %v229_v7 = vld [vmem:[#allocation5 + $0x500] sm:$0xff]  ;;  %v246_v8 = vld [vmem:[#allocation5 + $0x588] sm:$0xff] }
  0x52   :  { %332 = vmatmul.f32.vlgmr.msra.gmra.mxu1 %v272_v49  ;;  %372 = vmatmul.f32.vlgmr.msra.gmra.mxu3 %v274_v50  ;;  %v202_v49 = vld [vmem:[#allocation5 + $0x428] sm:$0xff]  ;;  %v219_v50 = vld [vmem:[#allocation5 + $0x4b0] sm:$0xff] }
  0x53   :  { %457 = vmatpush.msra.mxu0 %v211_v9  ;;  %476 = vmatpush.msra.mxu1 %v228_v10  ;;  %v280_v9 = vld.sshfl [vmem:[#allocation1] sm:$0xff pattern:$0x73625140]  ;;  %v282_v10 = vld.sshfl [vmem:[#allocation1 + $0x10] sm:$0xff pattern:$0x73625140] }
  0x54   :  { %497 = vmatpush.msra.mxu2 %v243_v11  ;;  %516 = vmatpush.msra.mxu3 %v260_v12  ;;  %v213_v11 = vld [vmem:[#allocation5 + $0x480] sm:$0xff] }
  0x55   :  { %458 = vmatpush.msra.mxu0 %v210_v13  ;;  %477 = vmatpush.msra.mxu1 %v227_v14  ;;  %v245_v12 = vld [vmem:[#allocation5 + $0x580] sm:$0xff]  ;;  %v281_v13 = vld.sshfl [vmem:[#allocation1 + $0x8] sm:$0xff pattern:$0x73625140] }
  0x56   :  { %498 = vmatpush.msra.mxu2 %v242_v15  ;;  %517 = vmatpush.msra.mxu3 %v259_v16  ;;  %v283_v14 = vld.sshfl [vmem:[#allocation1 + $0x18] sm:$0xff pattern:$0x73625140]  ;;  %v551_v16 = vld [vmem:[#allocation7 + $0x70] sm:$0xff] }
  0x57   :  { %459 = vmatpush.msra.mxu0 %v209_v17  ;;  %478 = vmatpush.msra.mxu1 %v226_v18  ;;  %v552_v15 = vld [vmem:[#allocation7 + $0x78] sm:$0xff]  ;;  %v550_v17 = vld [vmem:[#allocation7 + $0x68] sm:$0xff]  ;;  %v549_v18 = vld [vmem:[#allocation7 + $0x60] sm:$0xff] }
  0x58   :  { %499 = vmatpush.msra.mxu2 %v241_v19  ;;  %518 = vmatpush.msra.mxu3 %v258_v20  ;;  %v548_v19 = vld [vmem:[#allocation7 + $0x58] sm:$0xff]  ;;  %v547_v20 = vld [vmem:[#allocation7 + $0x50] sm:$0xff] }
  0x59   :  { %432 = vmatmul.f32.vlgmr.msrb.gmra.mxu2 %v277_v21  ;;  %460 = vmatpush.msra.mxu0 %v208_v22  ;;  %v546_v21 = vld [vmem:[#allocation7 + $0x48] sm:$0xff]  ;;  %v545_v22 = vld [vmem:[#allocation7 + $0x40] sm:$0xff] }
  0x5a   :  { %479 = vmatpush.msra.mxu1 %v225_v23  ;;  %500 = vmatpush.msra.mxu2 %v240_v24  ;;  %v544_v23 = vld [vmem:[#allocation7 + $0x38] sm:$0xff]  ;;  %v602_v24 = vld [vmem:[%s762_s2] ss:$0 sm:$0xff] }
  0x5b   :  { %519 = vmatpush.msra.mxu3 %v257_v25  ;;  %392 = vmatmul.f32.vlgmr.msrb.gmra.mxu0 %v275_v26  ;;  %v543_v25 = vld [vmem:[#allocation7 + $0x30] sm:$0xff] }
  0x5c   :  { %452 = vmatmul.f32.vlgmr.msrb.gmra.mxu3 %v278_v27  ;;  %461 = vmatpush.msra.mxu0 %v207_v28  ;;  %v542_v27 = vld [vmem:[#allocation7 + $0x28] sm:$0xff] }
  0x5d   :  { %480 = vmatpush.msra.mxu1 %v224_v29  ;;  %501 = vmatpush.msra.mxu2 %v239_v30  ;;  %v541_v29 = vld [vmem:[#allocation7 + $0x20] sm:$0xff] }
  0x5e   :  { %520 = vmatpush.msra.mxu3 %v256_v31  ;;  %412 = vmatmul.f32.vlgmr.msrb.gmra.mxu1 %v276_v32  ;;  %v540_v31 = vld [vmem:[#allocation7 + $0x18] sm:$0xff] }
  0x5f   :  { %462 = vmatpush.msra.mxu0 %v206_v33  ;;  %481 = vmatpush.msra.mxu1 %v223_v34  ;;  %v539_v33 = vld [vmem:[#allocation7 + $0x10] sm:$0xff] }
  0x60   :  { %502 = vmatpush.msra.mxu2 %v238_v35  ;;  %521 = vmatpush.msra.mxu3 %v255_v36  ;;  %v538_v35 = vld [vmem:[#allocation7 + $0x8] sm:$0xff] }
  0x61   :  { %463 = vmatpush.msra.mxu0 %v205_v37  ;;  %482 = vmatpush.msra.mxu1 %v222_v38  ;;  %v537_v37 = vld [vmem:[#allocation7] sm:$0xff] }
  0x62   :  { %503 = vmatpush.msra.mxu2 %v237_v39  ;;  %522 = vmatpush.msra.mxu3 %v254_v40 }
  0x63   :  { %464 = vmatpush.msra.mxu0 %v204_v41  ;;  %483 = vmatpush.msra.mxu1 %v221_v42 }
  0x64   :  { %504 = vmatpush.msra.mxu2 %v236_v43  ;;  %523 = vmatpush.msra.mxu3 %v253_v44 }
  0x65   :  { %465 = vmatpush.msra.mxu0 %v203_v45  ;;  %484 = vmatpush.msra.mxu1 %v220_v46 }
  0x66   :  { %505 = vmatpush.msra.mxu2 %v235_v47  ;;  %524 = vmatpush.msra.mxu3 %v252_v48 }
  0x67   :  { %466 = vmatpush.msra.mxu0 %v202_v49  ;;  %485 = vmatpush.msra.mxu1 %v219_v50 }
  0x68   :  { %506 = vmatpush.msra.mxu2 %v234_v51  ;;  %525 = vmatpush.msra.mxu3 %v251_v52 }
  0x69   :  { %467 = vmatpush.msra.mxu0 %v201_v53  ;;  %486 = vmatpush.msra.mxu1 %v218_v54 }
  0x6a   :  { %507 = vmatpush.msra.mxu2 %v233_v55  ;;  %526 = vmatpush.msra.mxu3 %v250_v56 }
  0x6b   :  { %468 = vmatpush.msra.mxu0 %v200_v57  ;;  %487 = vmatpush.msra.mxu1 %v217_v58  ;;  %v603_v57 = vld [vmem:[%s764_s4] ss:$0 sm:$0xff] }
  0x6c   :  { %508 = vmatpush.msra.mxu2 %v232_v59  ;;  %527 = vmatpush.msra.mxu3 %v249_v60 }
  0x6d   :  { %469 = vmatpush.msra.mxu0 %v199_v61  ;;  %488 = vmatpush.msra.mxu1 %v216_v62 }
  0x6e   :  { %509 = vmatpush.msra.mxu2 %v231_v63  ;;  %528 = vmatpush.msra.mxu3 %v248_v0 }
  0x6f   :  { %470 = vmatpush.msra.mxu0 %v198_v1  ;;  %489 = vmatpush.msra.mxu1 %v215_v2 }
  0x70   :  { %510 = vmatpush.msra.mxu2 %v230_v3  ;;  %529 = vmatpush.msra.mxu3 %v247_v4 }
  0x71   :  { %471 = vmatpush.msra.mxu0 %v197_v5  ;;  %490 = vmatpush.msra.mxu1 %v214_v6 }
  0x72   :  { %511 = vmatpush.msra.mxu2 %v229_v7  ;;  %530 = vmatpush.msra.mxu3 %v246_v8 }
  0x73   :  { %472 = vmatmul.f32.vlgmr.msra.gmra.mxu0 %v280_v9  ;;  %512 = vmatmul.f32.vlgmr.msra.gmra.mxu2 %v282_v10 }
  0x74   :  { %491 = vmatpush.msra.mxu1 %v213_v11  ;;  %531 = vmatpush.msra.mxu3 %v245_v12 }
  0x75   :  { %492 = vmatmul.f32.vlgmr.msra.gmra.mxu1 %v281_v13  ;;  %532 = vmatmul.f32.vlgmr.msra.gmra.mxu3 %v283_v14 }
  0x76   :  { %557 = vmatpush.msrb.mxu0 %v552_v15 }
  0x78   :  { %558 = vmatpush.msrb.mxu0 %v551_v16 }
  0x7a   :  { %559 = vmatpush.msrb.mxu0 %v550_v17 }
  0x7c   :  { %560 = vmatpush.msrb.mxu0 %v549_v18 }
  0x7e   :  { %561 = vmatpush.msrb.mxu0 %v548_v19 }
  0x80   :  { %562 = vmatpush.msrb.mxu0 %v547_v20 }
  0x82   :  { %563 = vmatpush.msrb.mxu0 %v546_v21 }
  0x84   :  { %564 = vmatpush.msrb.mxu0 %v545_v22 }
  0x86   :  { %565 = vmatpush.msrb.mxu0 %v544_v23 }
  0x88   :  { %566 = vmatpush.msrb.mxu0 %v543_v25 }
  0x8a   :  { %567 = vmatpush.msrb.mxu0 %v542_v27 }
  0x8c   :  { %568 = vmatpush.msrb.mxu0 %v541_v29 }
  0x8e   :  { %569 = vmatpush.msrb.mxu0 %v540_v31 }
  0x90   :  { %570 = vmatpush.msrb.mxu0 %v539_v33 }
  0x92   :  { %571 = vmatpush.msrb.mxu0 %v538_v35 }
  0x94   :  { %572 = vmatpush.msrb.mxu0 %v537_v37 }
  0xcc   :  { %v313_v26 = vpop.f32.mrf.mxu0 }
  0xcd   :  { %v314_v28 = vadd.f32 %v602_v24, %v313_v26 }
  0xcf   :  { %v333_v30 = vpop.f32.mrf.mxu1 }
  0xd0   :  { %v334_v32 = vadd.f32 %v333_v30, %v314_v28 }
  0xd2   :  { %v353_v34 = vpop.f32.mrf.mxu2 }
  0xd3   :  { %v354_v36 = vadd.f32 %v353_v34, %v334_v32 }
  0xd5   :  { %v373_v38 = vpop.f32.mrf.mxu3 }
  0xd6   :  { %v374_v39 = vadd.f32 %v373_v38, %v354_v36 }
  0xd8   :  { %v393_v40 = vpop.f32.mrf.mxu0 }
  0xd9   :  { %v394_v41 = vadd.f32 %v393_v40, %v374_v39 }
  0xdb   :  { %v413_v42 = vpop.f32.mrf.mxu1 }
  0xdc   :  { %v414_v43 = vadd.f32 %v413_v42, %v394_v41  ;;  %v433_v44 = vpop.f32.mrf.mxu2 }
  0xde   :  { %v434_v45 = vadd.f32 %v433_v44, %v414_v43 }
  0xdf   :  { %v453_v46 = vpop.f32.mrf.mxu3 }
  0xe0   :  { %v454_v47 = vadd.f32 %v453_v46, %v434_v45 }
  0xf0   :  { %v473_v48 = vpop.f32.mrf.mxu0 }
  0xf1   :  { %v474_v49 = vadd.f32 %v473_v48, %v454_v47 }
  0xf2   :  { %v493_v50 = vpop.f32.mrf.mxu1 }
  0xf3   :  { %v494_v51 = vadd.f32 %v493_v50, %v474_v49 }
  0xf6   :  { %v513_v52 = vpop.f32.mrf.mxu2 }
  0xf7   :  { %v514_v53 = vadd.f32 %v513_v52, %v494_v51 }
  0xf8   :  { %v533_v54 = vpop.f32.mrf.mxu3 }
  0xf9   :  { %v534_v55 = vadd.f32 %v533_v54, %v514_v53 }
  0xfb   :  { %v536_v56 = vmax.f32 %v534_v55, 0.0 }
  0xfd   :  { %573 = vmatmul.f32.vlgmr.msrb.gmra.mxu0 %v536_v56 }
 0x17a   :  { %v574_v58 = vpop.f32.mrf.mxu0 }
 0x17b   :  { %v575_v59 = vadd.f32 %v603_v57, %v574_v58 }
 0x17d   :  { %577 = vst [vmem:[#allocation8] sm:$0x3] %v575_v59 }
 0x17e   :  { %588 = dma.vmem_to_hbm [thread:$0]  %s584_s11, 32, %s586_s14, [#allocation4]  }
 0x17f   :  { %704 = dma.done.wait [#allocation4], 32  }
 0x180   :  { %705 = vsyncadd [#allocation4], 4294967264 }
 0x181   :  { %593 = vsyncpa [#allocation3], 1 }
 0x182   :  { %594 = vsyncpa [#allocation6], 1 }
 0x183   :  { %595 = vsyncpa [#allocation4], 1 }

</bundles_post_ra>
